<compile_context>
chip_gen: v6e
topology: v6e:2x2x1
jax: 0.10.0
libtpu: 0.0.40
codegen_flags: <defaults>
</compile_context>

<pallas_src>
import jax
import jax.numpy as jnp
from jax.experimental import pallas as pl
from jax.experimental.pallas import tpu as pltpu


def _round_up(n, m):
    return ((n + m - 1) // m) * m


def mlp_kernel(x_ref, w1_ref, b1_ref, w2_ref, b2_ref, o_ref):
    # fc1: (bb, D) @ (D, Hp) + (1, Hp); K=70 lanes are masked by Mosaic.
    h = jnp.dot(x_ref[...], w1_ref[...], preferred_element_type=jnp.float32)
    h = h + b1_ref[...]
    # nonlinearity: Sigmoid (exp goes to the EUP slot)
    h = jax.nn.sigmoid(h)
    # fc2: (bb, Hp) @ (Hp, O) + (1, O); padded hidden rows of w2 are zero.
    o = jnp.dot(h.astype(w2_ref.dtype), w2_ref[...],
                preferred_element_type=jnp.float32)
    o_ref[...] = (o + b2_ref[...]).astype(o_ref.dtype)


def mlp_forward(x, w1, b1, w2, b2, *, block_b=2048):
    """x: (B, input_dim); w1: (input_dim, hidden); b1: (hidden,);
       w2: (hidden, out); b2: (out,). Returns (B, out).

    Weights are stored (in_features, out_features), i.e. transposed from
    PyTorch's nn.Linear (out, in) convention.
    """
    B, D = x.shape
    H = w1.shape[1]
    O = w2.shape[1]

    # Pad only the hidden dim of the (tiny, resident) weights to 128 lanes.
    H_p = _round_up(H, 128)
    w1_p = jnp.zeros((D, H_p), w1.dtype).at[:, :H].set(w1)
    b1_p = jnp.zeros((1, H_p), b1.dtype).at[0, :H].set(b1)
    w2_p = jnp.zeros((H_p, O), w2.dtype).at[:H, :].set(w2)
    b2_p = b2.reshape(1, O)

    # Batch tiling: divisor-based so per-tile padding is < 8 rows; keep the
    # grid >= 2 steps when there are enough rows (v7x has 2 TensorCores).
    n_tiles = max(pl.cdiv(B, block_b), 1)
    if B >= 16:
        n_tiles = max(n_tiles, 2)
    bb = _round_up(pl.cdiv(B, n_tiles), 8)
    B_p = n_tiles * bb

    # Only pad the batch when needed (bounded to < 8 rows per tile).
    x_p = x if B_p == B else jnp.zeros((B_p, D), x.dtype).at[:B].set(x)

    out_p = pl.pallas_call(
        mlp_kernel,
        out_shape=jax.ShapeDtypeStruct((B_p, O), x.dtype),
        grid=(n_tiles,),
        in_specs=[
            pl.BlockSpec((bb, D), lambda i: (i, 0)),    # x: tiled over batch, D unpadded
            pl.BlockSpec((D, H_p), lambda i: (0, 0)),   # w1: resident
            pl.BlockSpec((1, H_p), lambda i: (0, 0)),   # b1: resident
            pl.BlockSpec((H_p, O), lambda i: (0, 0)),   # w2: resident
            pl.BlockSpec((1, O), lambda i: (0, 0)),     # b2: resident
        ],
        out_specs=pl.BlockSpec((bb, O), lambda i: (i, 0)),  # O unpadded (lane-mask is cheap)
        compiler_params=pltpu.CompilerParams(
            dimension_semantics=("parallel",)),
    )(x_p, w1_p, b1_p, w2_p, b2_p)

    # Strip batch padding only (no lane padding to strip).
    return out_p if B_p == B else out_p[:B]


def init_params(key, input_dim=70, hidden_num=40, out_dim=7, dtype=jnp.float32):
    """Deterministic init mimicking PyTorch nn.Linear: U(-1/sqrt(fan_in), +1/sqrt(fan_in))."""
    k1, k2, k3, k4 = jax.random.split(key, 4)
    bound1 = 1.0 / (input_dim ** 0.5)
    bound2 = 1.0 / (hidden_num ** 0.5)
    w1 = jax.random.uniform(k1, (input_dim, hidden_num), dtype, -bound1, bound1)
    b1 = jax.random.uniform(k2, (hidden_num,), dtype, -bound1, bound1)
    w2 = jax.random.uniform(k3, (hidden_num, out_dim), dtype, -bound2, bound2)
    b2 = jax.random.uniform(k4, (out_dim,), dtype, -bound2, bound2)
    return w1, b1, w2, b2


if __name__ == "__main__":
    key = jax.random.PRNGKey(0)
    kx, kp, kx2 = jax.random.split(key, 3)

    B, D, H, O = 8, 70, 40, 7
    x = jax.random.normal(kx, (B, D), dtype=jnp.float32)
    w1, b1, w2, b2 = init_params(kp, input_dim=D, hidden_num=H, out_dim=O)

    out = mlp_forward(x, w1, b1, w2, b2)
    out = jax.block_until_ready(out)

    # Pure-JAX reference check (same math as the PyTorch forward).
    ref = jax.nn.sigmoid(x @ w1 + b1) @ w2 + b2
    assert out.shape == (B, O)
    assert jnp.allclose(out, ref, atol=1e-5, rtol=1e-5), "mismatch vs reference"

    # Also exercise the multi-tile path (grid > 1, batch not a tile multiple).
    B2 = 1037
    x2 = jax.random.normal(kx2, (B2, D), dtype=jnp.float32)
    out2 = jax.block_until_ready(mlp_forward(x2, w1, b1, w2, b2))
    ref2 = jax.nn.sigmoid(x2 @ w1 + b1) @ w2 + b2
    assert out2.shape == (B2, O)
    assert jnp.allclose(out2, ref2, atol=1e-5, rtol=1e-5), "mismatch vs reference (batched)"

    print("KERNEL_OK")
</pallas_src>

<mosaic_0001>
module attributes {stable_mosaic.version = 11 : i64} {
  func.func @mlp_kernel(%arg0: i32, %arg1: memref<8x70xf32, #tpu.memory_space<vmem>>, %arg2: memref<70x128xf32, #tpu.memory_space<vmem>>, %arg3: memref<1x128xf32, #tpu.memory_space<vmem>>, %arg4: memref<128x7xf32, #tpu.memory_space<vmem>>, %arg5: memref<1x7xf32, #tpu.memory_space<vmem>>, %arg6: memref<8x7xf32, #tpu.memory_space<vmem>>) attributes {dimension_semantics = [#tpu.dimension_semantics<parallel>], iteration_bounds = array<i64: 1>, scalar_prefetch = 0 : i64, scratch_operands = 0 : i64, tpu.core_type = #tpu.core_type<tc>, window_params = [{transform_indices = @transform_0, window_bounds = array<i64: 8, 70>}, {pipeline_mode = #tpu.pipeline_mode<synchronous>, transform_indices = @transform_1, window_bounds = array<i64: 70, 128>}, {pipeline_mode = #tpu.pipeline_mode<synchronous>, transform_indices = @transform_2, window_bounds = array<i64: 1, 128>}, {pipeline_mode = #tpu.pipeline_mode<synchronous>, transform_indices = @transform_3, window_bounds = array<i64: 128, 7>}, {pipeline_mode = #tpu.pipeline_mode<synchronous>, transform_indices = @transform_4, window_bounds = array<i64: 1, 7>}, {transform_indices = @transform_5, window_bounds = array<i64: 8, 7>}]} {
    %c0 = arith.constant 0 : index
    %c0_0 = arith.constant 0 : index
    %0 = vector.load %arg1[%c0, %c0_0] : memref<8x70xf32, #tpu.memory_space<vmem>>, vector<8x70xf32>
    %c0_1 = arith.constant 0 : index
    %c0_2 = arith.constant 0 : index
    %1 = vector.load %arg2[%c0_1, %c0_2] : memref<70x128xf32, #tpu.memory_space<vmem>>, vector<70x128xf32>
    %cst = arith.constant dense<0.000000e+00> : vector<8x128xf32>
    %2 = tpu.matmul %0, %1, %cst {dimension_numbers = #tpu.dot_dimension_numbers<[1], [0], [0], [1], [0, 0, 1, 1], [], []>} : vector<8x70xf32>, vector<70x128xf32>, vector<8x128xf32> -> vector<8x128xf32>
    %c0_3 = arith.constant 0 : index
    %c0_4 = arith.constant 0 : index
    %3 = vector.load %arg3[%c0_3, %c0_4] : memref<1x128xf32, #tpu.memory_space<vmem>>, vector<1x128xf32>
    %4 = vector.broadcast %3 : vector<1x128xf32> to vector<8x128xf32>
    %5 = arith.addf %2, %4 : vector<8x128xf32>
    %6 = arith.negf %5 : vector<8x128xf32>
    %7 = math.exp %6 : vector<8x128xf32>
    %cst_5 = arith.constant 1.000000e+00 : f32
    %8 = vector.broadcast %cst_5 : f32 to vector<8x128xf32>
    %9 = arith.addf %8, %7 : vector<8x128xf32>
    %10 = arith.divf %8, %9 : vector<8x128xf32>
    %c0_6 = arith.constant 0 : index
    %c0_7 = arith.constant 0 : index
    %11 = vector.load %arg4[%c0_6, %c0_7] : memref<128x7xf32, #tpu.memory_space<vmem>>, vector<128x7xf32>
    %cst_8 = arith.constant dense<0.000000e+00> : vector<8x7xf32>
    %12 = tpu.matmul %10, %11, %cst_8 {dimension_numbers = #tpu.dot_dimension_numbers<[1], [0], [0], [1], [0, 0, 1, 1], [], []>} : vector<8x128xf32>, vector<128x7xf32>, vector<8x7xf32> -> vector<8x7xf32>
    %c0_9 = arith.constant 0 : index
    %c0_10 = arith.constant 0 : index
    %13 = vector.load %arg5[%c0_9, %c0_10] : memref<1x7xf32, #tpu.memory_space<vmem>>, vector<1x7xf32>
    %14 = vector.broadcast %13 : vector<1x7xf32> to vector<8x7xf32>
    %15 = arith.addf %12, %14 : vector<8x7xf32>
    %c0_11 = arith.constant 0 : index
    %c0_12 = arith.constant 0 : index
    %16 = vector.load %arg6[%c0_11, %c0_12] : memref<8x7xf32, #tpu.memory_space<vmem>>, vector<8x7xf32>
    tpu.vector_store %arg6[%c0_11, %c0_12], %15 {strides = array<i32>} : memref<8x7xf32, #tpu.memory_space<vmem>>, vector<8x7xf32>,
    return
  }
  func.func @transform_0(%arg0: i32) -> (i32, i32) {
    %c0_i32 = arith.constant 0 : i32
    %c0_i32_0 = arith.constant 0 : i32
    return %arg0, %c0_i32 : i32, i32
  }
  func.func @transform_1(%arg0: i32) -> (i32, i32) {
    %c0_i32 = arith.constant 0 : i32
    %c0_i32_0 = arith.constant 0 : i32
    %c0_i32_1 = arith.constant 0 : i32
    return %c0_i32, %c0_i32_0 : i32, i32
  }
  func.func @transform_2(%arg0: i32) -> (i32, i32) {
    %c0_i32 = arith.constant 0 : i32
    %c0_i32_0 = arith.constant 0 : i32
    %c0_i32_1 = arith.constant 0 : i32
    return %c0_i32, %c0_i32_0 : i32, i32
  }
  func.func @transform_3(%arg0: i32) -> (i32, i32) {
    %c0_i32 = arith.constant 0 : i32
    %c0_i32_0 = arith.constant 0 : i32
    %c0_i32_1 = arith.constant 0 : i32
    return %c0_i32, %c0_i32_0 : i32, i32
  }
  func.func @transform_4(%arg0: i32) -> (i32, i32) {
    %c0_i32 = arith.constant 0 : i32
    %c0_i32_0 = arith.constant 0 : i32
    %c0_i32_1 = arith.constant 0 : i32
    return %c0_i32, %c0_i32_0 : i32, i32
  }
  func.func @transform_5(%arg0: i32) -> (i32, i32) {
    %c0_i32 = arith.constant 0 : i32
    %c0_i32_0 = arith.constant 0 : i32
    return %arg0, %c0_i32 : i32, i32
  }
}

</mosaic_0001>

<bundles_post_ra>
// kernel: tpu_custom_call.1
= control target key start
LH: loop header
LB: loop body
LE: loop exit
PB: predicated region body
PF: predicated region fallthrough
CT: control target
= control target key end

     0   :  { %vm42_vm0 = vcmask 1045504   ;;  %v348_v1 = vmov 0.0   ;;  %vm349_vm1 = vmmov 0   ;;  %s495_s0 = inlined_call_operand.vmem [shape: f32[8,70], index: 0, kind: input, shape index: {}]   ;;  %s496_s1 = inlined_call_operand.vmem [shape: f32[70,128], index: 1, kind: input, shape index: {}]   ;;  %s497_s2 = inlined_call_operand.vmem [shape: f32[1,128], index: 2, kind: input, shape index: {}]   ;;  %s498_s3 = inlined_call_operand.vmem [shape: f32[128,7], index: 3, kind: input, shape index: {}]   ;;  %s499_s4 = inlined_call_operand.vmem [shape: f32[1,7], index: 4, kind: input, shape index: {}]   ;;  %s500_s5 = inlined_call_operand.hbm [shape: f32[8,7], index: 5, kind: output, shape index: {}]  }
   0x1   :  { %v30_v0 = vld [vmem:[%s496_s1 + $0x40] sm:$0x3f]  ;;  %263 = vmatprep.subr.mxu0 %v348_v1  ;;  %v29_v2 = vld [vmem:[%s496_s1 + $0x38] sm:$0xff]  ;;  %284 = vmatprep.subr.mxu1 %v348_v1  ;;  %v28_v3 = vld [vmem:[%s496_s1 + $0x30] sm:$0xff] }
   0x2   :  { %264 = vmatpush3.msk.msra.mxu0 %vm42_vm0, %v30_v0  ;;  %281 = vmatprep.mubr.msk.f32.mxu0 %vm349_vm1, %v348_v1 }
   0x3   :  { %265 = vmatprep.subr.mxu0 %v348_v1  ;;  %316 = vmatprep.mubr.msk.f32.mxu1 %vm349_vm1, %v348_v1 }
   0x4   :  { %10 = vsyncpa [#allocation3], 0  ;;  %266 = vmatpush3.msra.mxu0 %v29_v2  ;;  %v27_v4 = vld [vmem:[%s496_s1 + $0x28] sm:$0xff]  ;;  %v26_v5 = vld [vmem:[%s496_s1 + $0x20] sm:$0xff]  ;;  %vm38_vm2 = vcmask 572416   ;;  %s350_s19 = smov [#allocation2]  }
   0x5   :  { %267 = vmatprep.subr.mxu0 %v348_v1  ;;  %v25_v6 = vld [vmem:[%s496_s1 + $0x18] sm:$0xff]  ;;  %v24_v7 = vld [vmem:[%s496_s1 + $0x10] sm:$0xff]  ;;  %v23_v8 = vld [vmem:[%s496_s1 + $0x8] sm:$0xff]  ;;  %s223_s20 = sshll.u32 %s350_s19, 4  ;;  %vm215_vm3 = vcmask 56320   ;;  %s224_s20 = int_to_ptr.vmem [resolvable:$true] %s223_s20 }
   0x6   :  { %268 = vmatpush3.msra.mxu0 %v28_v3  ;;  %v22_v9 = vld [vmem:[%s496_s1] sm:$0xff]  ;;  %v137_v11 = vld [vmem:[%s498_s3 + $0x78] sm:$0xff]  ;;  %v136_v12 = vld [vmem:[%s498_s3 + $0x70] sm:$0xff]  ;;  %p331_p1 = scmp.lt.s32.totalorder %s224_s20, %s224_s20 }
   0x7   :  { %269 = vmatprep.subr.mxu0 %v348_v1  ;;  %v21_v10 = vld [vmem:[%s495_s0] sm:$0xff]  ;;  %285 = vmatpush3.msra.mxu1 %v137_v11  ;;  %v135_v13 = vld [vmem:[%s498_s3 + $0x68] sm:$0xff]  ;;  %v133_v15 = vld [vmem:[%s498_s3 + $0x58] sm:$0xff] }
   0x8   :  { %270 = vmatpush3.msra.mxu0 %v27_v4  ;;  %286 = vmatprep.subr.mxu1 %v348_v1  ;;  %v134_v14 = vld [vmem:[%s498_s3 + $0x60] sm:$0xff]  ;;  %v132_v16 = vld [vmem:[%s498_s3 + $0x50] sm:$0xff]  ;;  %v131_v17 = vld [vmem:[%s498_s3 + $0x48] sm:$0xff] }
   0x9   :  { %271 = vmatprep.subr.mxu0 %v348_v1  ;;  %287 = vmatpush3.msra.mxu1 %v136_v12  ;;  %v130_v18 = vld [vmem:[%s498_s3 + $0x40] sm:$0xff]  ;;  %v129_v19 = vld [vmem:[%s498_s3 + $0x38] sm:$0xff]  ;;  %v128_v20 = vld [vmem:[%s498_s3 + $0x30] sm:$0xff] }
   0xa   :  { %272 = vmatpush3.msra.mxu0 %v26_v5  ;;  %288 = vmatprep.subr.mxu1 %v348_v1  ;;  %v127_v21 = vld [vmem:[%s498_s3 + $0x28] sm:$0xff]  ;;  %v126_v22 = vld [vmem:[%s498_s3 + $0x20] sm:$0xff]  ;;  %v125_v23 = vld [vmem:[%s498_s3 + $0x18] sm:$0xff] }
   0xb   :  { %273 = vmatprep.subr.mxu0 %v348_v1  ;;  %289 = vmatpush3.msra.mxu1 %v135_v13  ;;  %v124_v24 = vld [vmem:[%s498_s3 + $0x10] sm:$0xff]  ;;  %v123_v25 = vld [vmem:[%s498_s3 + $0x8] sm:$0xff]  ;;  %v122_v26 = vld [vmem:[%s498_s3] sm:$0xff] }
   0xc   :  { %274 = vmatpush3.msra.mxu0 %v25_v6  ;;  %290 = vmatprep.subr.mxu1 %v348_v1  ;;  %v231_v27 = vld [vmem:[%s497_s2] ss:$0 sm:$0xff]  ;;  %s326_s2 = scalar_lea.vmem %s224_s20, 128 }
   0xd   :  { %275 = vmatprep.subr.mxu0 %v348_v1  ;;  %291 = vmatpush3.msra.mxu1 %v134_v14  ;;  %v235_v35 = vld [vmem:[%s499_s4] ss:$0 sm:$0xff]  ;;  %p327_p0 = scmp.ne.s32.totalorder %s224_s20, %s326_s2  ;;  %p332_p2 = scmp.lt.s32.totalorder %s326_s2, %s326_s2 }
   0xe   :  { %276 = vmatpush3.msra.mxu0 %v24_v7  ;;  %292 = vmatprep.subr.mxu1 %v348_v1 }
   0xf   :  { %277 = vmatprep.subr.mxu0 %v348_v1  ;;  %293 = vmatpush3.msra.mxu1 %v133_v15  ;;  %p333_p3 = por %p332_p2, %p331_p1 }
  0x10   :  { %278 = vmatpush3.msra.mxu0 %v23_v8  ;;  %294 = vmatprep.subr.mxu1 %v348_v1 }
  0x11   :  { %279 = vmatprep.subr.mxu0 %v348_v1  ;;  %295 = vmatpush3.msra.mxu1 %v132_v16  ;;  %p334_p4 = pnand %p333_p3, %p327_p0 }
  0x12   :  { %280 = vmatpush3.msra.mxu0 %v22_v9  ;;  %296 = vmatprep.subr.mxu1 %v348_v1 }
  0x13   :  { %282 = vmatmul.mubr.msk.f32.vlgmr.msra.gmra.mxu0 %vm38_vm2, %v21_v10  ;;  %297 = vmatpush3.msra.mxu1 %v131_v17 }
  0x14   :  { %298 = vmatprep.subr.mxu1 %v348_v1 }
  0x15   :  { %299 = vmatpush3.msra.mxu1 %v130_v18 }
  0x16   :  { %300 = vmatprep.subr.mxu1 %v348_v1 }
  0x17   :  { %301 = vmatpush3.msra.mxu1 %v129_v19 }
  0x18   :  { %302 = vmatprep.subr.mxu1 %v348_v1 }
  0x19   :  { %303 = vmatpush3.msra.mxu1 %v128_v20 }
  0x1a   :  { %304 = vmatprep.subr.mxu1 %v348_v1 }
  0x1b   :  { %305 = vmatpush3.msra.mxu1 %v127_v21 }
  0x1c   :  { %306 = vmatprep.subr.mxu1 %v348_v1 }
  0x1d   :  { %307 = vmatpush3.msra.mxu1 %v126_v22 }
  0x1e   :  { %308 = vmatprep.subr.mxu1 %v348_v1 }
  0x1f   :  { %309 = vmatpush3.msra.mxu1 %v125_v23 }
  0x20   :  { %310 = vmatprep.subr.mxu1 %v348_v1 }
  0x21   :  { %311 = vmatpush3.msra.mxu1 %v124_v24 }
  0x22   :  { %312 = vmatprep.subr.mxu1 %v348_v1 }
  0x23   :  { %313 = vmatpush3.msra.mxu1 %v123_v25 }
  0x24   :  { %314 = vmatprep.subr.mxu1 %v348_v1 }
  0x25   :  { %315 = vmatpush3.msra.mxu1 %v122_v26 }
  0xd3   :  { %v112_v28 = vpop.f32.mrf.mxu0 }
  0xd4   :  { %v113_v29 = vadd.f32 %v231_v27, %v112_v28 }
  0xd5   :  { %v283_v30 = vpop.f32.mrf.mxu0 }
  0xd6   :  { %v234_v31 = vmul.f32 -1.442695, %v113_v29 }
  0xd8   :  { %322 = vpow2.f32 %v234_v31 }
  0xe5   :  { %v323_v32 = vpop.eup %322 }
  0xe6   :  { %v119_v33 = vadd.f32 1.0, %v323_v32 }
  0xe8   :  { %324 = vrcp.f32 %v119_v33 }
  0xf5   :  { %v325_v34 = vpop.eup %324 }
  0xf6   :  { %317 = vmatmul.mubr.f32.vlgmr.msra.gmra.mxu1 %v325_v34 }
 0x1b6   :  { %v211_v36 = vpop.f32.mrf.mxu1 }
 0x1b7   :  { %v212_v37 = vadd.f32 %v235_v35, %v211_v36 }
 0x1b8   :  { %v318_v38 = vpop.f32.mrf.mxu1 }
 0x1b9   :  { %216 = vst.msk [vmem:[#allocation2] sm:$0xff] %vm215_vm3, %v212_v37 }
 0x1ba   :  { %337 = shalt.err (!%p334_p4)
}
 0x1bb   :  { %226 = dma.vmem_to_hbm [thread:$0]  %s224_s20, 128, %s500_s5, [#allocation3]  }
 0x1bc   :  { %346 = dma.done.wait [#allocation3], 128  }
 0x1bd   :  { %347 = vsyncadd [#allocation3], 4294967168 }
 0x1be   :  { %230 = vsyncpa [#allocation3], 1 }

</bundles_post_ra>
